<compile_context>
chip_gen: v7x
topology: tpu7x:2x2x1
jax: 0.10.0
libtpu: 0.0.40
codegen_flags: <defaults>
</compile_context>

<pallas_src>
import functools

import jax
import jax.numpy as jnp
from jax.experimental import pallas as pl
from jax.experimental.pallas import tpu as pltpu


def _round_up(x: int, m: int) -> int:
    return ((x + m - 1) // m) * m


def _ceil_div(a: int, b: int) -> int:
    return -(-a // b)


@functools.lru_cache(maxsize=None)
def _hw_caps():
    """Returns (max_tm, max_tk, max_tn, vmem_limit_bytes), generation-aware."""
    try:
        info = pltpu.get_tpu_info()
        vmem = int(getattr(info, "vmem_capacity_bytes", 64 * 1024 * 1024))
    except Exception:
        vmem = 64 * 1024 * 1024  # conservative fallback (v7x-class)
    if vmem >= 100 * 1024 * 1024:
        # v5e / v6e: 128 MiB VMEM -> bigger tiles, higher scoped limit.
        return (512, 1024, 1024, 64 * 1024 * 1024)
    # v7x-class: 64 MiB physical VMEM -> keep double-buffered footprint small.
    return (256, 1024, 1024, 40 * 1024 * 1024)


# ---------- single-block kernels (fast path & batched-heads path) -----------

def _affine_kernel_bias(x_ref, w_ref, b_ref, o_ref):
    o_ref[...] = (
        jnp.dot(x_ref[...], w_ref[...], preferred_element_type=jnp.float32)
        + b_ref[...]
    ).astype(o_ref.dtype)


def _affine_kernel(x_ref, w_ref, o_ref):
    o_ref[...] = jnp.dot(
        x_ref[...], w_ref[...], preferred_element_type=jnp.float32
    ).astype(o_ref.dtype)


# ---------- tiled kernels: accumulate directly into the resident o_ref ------

def _tiled_kernel_bias(x_ref, w_ref, b_ref, o_ref):
    k = pl.program_id(2)

    @pl.when(k == 0)
    def _():
        # Output tile is VMEM-resident across K (constant block index), so
        # seed it with the bias: no scratch accumulator, no epilogue pass.
        o_ref[...] = jnp.broadcast_to(b_ref[...], o_ref.shape).astype(o_ref.dtype)

    o_ref[...] += jnp.dot(
        x_ref[...], w_ref[...], preferred_element_type=jnp.float32
    )


def _tiled_kernel(x_ref, w_ref, o_ref):
    k = pl.program_id(2)

    @pl.when(k == 0)
    def _():
        o_ref[...] = jnp.zeros_like(o_ref)

    o_ref[...] += jnp.dot(
        x_ref[...], w_ref[...], preferred_element_type=jnp.float32
    )


# ----------------------------- dispatch --------------------------------------

@functools.partial(jax.jit, static_argnames=("caps", "precision"))
def _confnet_forward_impl(x, w, b, caps, precision):
    M, K = x.shape
    _, N = w.shape
    max_tm, max_tk, max_tn, vmem_limit = caps
    out_dtype = jnp.float32  # module numerics are f32; also the accumulator dtype

    if precision == "bfloat16":
        # Halve HBM traffic for the streamed operands; keep f32 accumulation.
        x = x.astype(jnp.bfloat16)
        w = w.astype(jnp.bfloat16)

    b2d = None if b is None else b.astype(jnp.float32).reshape(1, N)

    # ---- fast path: whole problem fits in one VMEM block (typical NESDE head)
    if M <= max_tm and K <= max_tk and N <= max_tn:
        out_shape = jax.ShapeDtypeStruct((M, N), out_dtype)
        if b2d is not None:
            return pl.pallas_call(_affine_kernel_bias, out_shape=out_shape)(x, w, b2d)
        return pl.pallas_call(_affine_kernel, out_shape=out_shape)(x, w)

    # ---- general tiled path (large hypernet-generated W) --------------------
    # M: keep grid_m == 1 whenever possible so W is streamed from HBM once.
    if M <= max_tm:
        tm = M
    else:
        tm = _round_up(_ceil_div(M, _ceil_div(M, max_tm)), 8)
    grid_m = _ceil_div(M, tm)

    # N: balance tiles to minimize edge waste (no padding; edge tile masked).
    if N <= max_tn:
        tn = N
    else:
        tn = _round_up(_ceil_div(N, _ceil_div(N, max_tn)), 128)
    grid_n = _ceil_div(N, tn)

    # v7x megacore: if M/N grids collapse to one tile, split N so both
    # TensorCores get work (harmless on single-TC v5e/v6e; splitting N only
    # re-reads the small x, never W).
    if grid_m * grid_n == 1 and N >= 256:
        tn = _round_up(_ceil_div(N, 2), 128)
        grid_n = _ceil_div(N, tn)

    # K: the only correctness-critical padding (zero tail contributes nothing).
    if K <= max_tk:
        tk, Kp = K, K
    else:
        nk = _ceil_div(K, max_tk)
        tk = _round_up(_ceil_div(K, nk), 128)
        Kp = nk * tk
    grid_k = Kp // tk

    xp = x if Kp == K else jnp.pad(x, ((0, 0), (0, Kp - K)))
    wp = w if Kp == K else jnp.pad(w, ((0, Kp - K), (0, 0)))

    grid = (grid_m, grid_n, grid_k)

    x_spec = pl.BlockSpec((tm, tk), lambda i, j, k: (i, k))
    w_spec = pl.BlockSpec((tk, tn), lambda i, j, k: (k, j))
    o_spec = pl.BlockSpec((tm, tn), lambda i, j, k: (i, j))

    cost = pl.CostEstimate(
        flops=2 * M * N * Kp,
        transcendentals=0,
        bytes_accessed=int(
            xp.size * xp.dtype.itemsize
            + wp.size * wp.dtype.itemsize
            + M * N * 4
            + (0 if b2d is None else N * 4)
        ),
    )
    cparams = pltpu.CompilerParams(
        dimension_semantics=("parallel", "parallel", "arbitrary"),
        vmem_limit_bytes=vmem_limit,
    )
    out_shape = jax.ShapeDtypeStruct((M, N), out_dtype)

    if b2d is not None:
        b_spec = pl.BlockSpec((1, tn), lambda i, j, k: (0, j))
        return pl.pallas_call(
            _tiled_kernel_bias,
            out_shape=out_shape,
            grid_spec=pltpu.PrefetchScalarGridSpec(
                num_scalar_prefetch=0,
                grid=grid,
                in_specs=[x_spec, w_spec, b_spec],
                out_specs=o_spec,
            ),
            compiler_params=cparams,
            cost_estimate=cost,
        )(xp, wp, b2d)

    return pl.pallas_call(
        _tiled_kernel,
        out_shape=out_shape,
        grid_spec=pltpu.PrefetchScalarGridSpec(
            num_scalar_prefetch=0,
            grid=grid,
            in_specs=[x_spec, w_spec],
            out_specs=o_spec,
        ),
        compiler_params=cparams,
        cost_estimate=cost,
    )(xp, wp)


@jax.jit
def _confnet_forward_heads_impl(x, w, b):
    H, M, K = x.shape
    _, _, N = w.shape
    out_dtype = jnp.float32

    x_spec = pl.BlockSpec((None, M, K), lambda h: (h, 0, 0))
    w_spec = pl.BlockSpec((None, K, N), lambda h: (h, 0, 0))
    o_spec = pl.BlockSpec((None, M, N), lambda h: (h, 0, 0))
    cparams = pltpu.CompilerParams(dimension_semantics=("parallel",))
    out_shape = jax.ShapeDtypeStruct((H, M, N), out_dtype)

    if b is not None:
        b3d = b.astype(jnp.float32).reshape(H, 1, N)
        b_spec = pl.BlockSpec((None, 1, N), lambda h: (h, 0, 0))
        return pl.pallas_call(
            _affine_kernel_bias,
            out_shape=out_shape,
            grid_spec=pltpu.PrefetchScalarGridSpec(
                num_scalar_prefetch=0,
                grid=(H,),
                in_specs=[x_spec, w_spec, b_spec],
                out_specs=o_spec,
            ),
            compiler_params=cparams,
        )(x, w, b3d)

    return pl.pallas_call(
        _affine_kernel,
        out_shape=out_shape,
        grid_spec=pltpu.PrefetchScalarGridSpec(
            num_scalar_prefetch=0,
            grid=(H,),
            in_specs=[x_spec, w_spec],
            out_specs=o_spec,
        ),
        compiler_params=cparams,
    )(x, w)


# ----------------------------- public API ------------------------------------

def confnet_forward(x, w, b=None, precision="float32"):
    """Pallas implementation of ConfNet.forward: y = x @ W (+ b).

    x: (batch, input_dim) f32; w: (input_dim, output_dim) f32;
    b: (output_dim,) f32 or None.  precision: "float32" | "bfloat16".
    """
    batch, input_dim = x.shape
    input_dim_w, output_dim = w.shape
    if input_dim != input_dim_w:
        raise ValueError("Passed wrong shape parameter!")
    if b is not None and b.shape != (output_dim,):
        raise ValueError("Passed wrong shape parameter!")
    return _confnet_forward_impl(x, w, b, _hw_caps(), precision)


def confnet_forward_heads(x, w, b=None, precision="float32"):
    """Batched NESDE heads fused into one pallas_call.

    x: (H, M, K), w: (H, K, N), b: (H, N) or None -> (H, M, N).
    Intended for the many-tiny-heads hypernet pattern (each head must fit in
    VMEM as a single block).
    """
    H, M, K = x.shape
    if w.shape[0] != H or w.shape[1] != K:
        raise ValueError("Passed wrong shape parameter!")
    N = w.shape[2]
    if b is not None and b.shape != (H, N):
        raise ValueError("Passed wrong shape parameter!")
    per_head_bytes = (M * K + K * N + M * N + N) * 4
    if per_head_bytes > 8 * 1024 * 1024:
        raise ValueError("Per-head block too large; use confnet_forward per head.")
    if precision == "bfloat16":
        x = x.astype(jnp.bfloat16)
        w = w.astype(jnp.bfloat16)
    return _confnet_forward_heads_impl(x, w, b)


class ConfNet:
    """JAX/Pallas port of the PyTorch ConfNet module (set_pars / forward)."""

    def __init__(self, input_dim, output_dim, bias=True, precision="float32"):
        self.bias = bias
        self.precision = precision
        self.par_shape = (input_dim, output_dim)
        self._par = jnp.zeros((input_dim, output_dim), jnp.float32)
        self._bias = jnp.zeros((output_dim,), jnp.float32) if bias else None

    def set_pars(self, par):
        if self.bias:
            w, b = par
            if tuple(w.shape) == self.par_shape and b.shape[0] == self.par_shape[1]:
                self._par = w
                self._bias = b
            else:
                raise ValueError("Passed wrong shape parameter!")
        else:
            if tuple(par.shape) == self.par_shape:
                self._par = par
            else:
                raise ValueError("Passed wrong shape parameter!")

    def get_pars(self):
        if self.bias:
            return [self._par, self._bias]
        return self._par

    def __call__(self, x):
        return confnet_forward(
            x, self._par, self._bias if self.bias else None, precision=self.precision
        )


if __name__ == "__main__":
    key = jax.random.PRNGKey(0)
    ks = jax.random.split(key, 10)
    HI = jax.lax.Precision.HIGHEST

    # --- Test 1: canonical tiny ConfNet head (fast path, bias) --------------
    batch, in_dim, out_dim = 8, 32, 32
    x = jax.random.normal(ks[0], (batch, in_dim), dtype=jnp.float32)
    w = jax.random.normal(ks[1], (in_dim, out_dim), dtype=jnp.float32) * 0.1
    b = jax.random.normal(ks[2], (out_dim,), dtype=jnp.float32) * 0.1
    net = ConfNet(in_dim, out_dim, bias=True)
    net.set_pars([w, b])
    y = jax.block_until_ready(net(x))
    y_ref = jnp.dot(x, w, precision=HI) + b
    assert jnp.allclose(y, y_ref, atol=1e-4, rtol=1e-4), "mismatch (fast path, bias)"

    # --- Test 2: non-aligned shapes, no bias (fast path) --------------------
    x2 = jax.random.normal(ks[3], (16, 48), dtype=jnp.float32)
    w2 = jax.random.normal(ks[4], (48, 40), dtype=jnp.float32) * 0.05
    net2 = ConfNet(48, 40, bias=False)
    net2.set_pars(w2)
    y2 = jax.block_until_ready(net2(x2))
    y2_ref = jnp.dot(x2, w2, precision=HI)
    assert jnp.allclose(y2, y2_ref, atol=1e-4, rtol=1e-4), "mismatch (fast path, no bias)"

    # --- Test 3: K large enough to exercise the tiled path + K padding ------
    M3, K3, N3 = 8, 1100, 32
    x3 = jax.random.normal(ks[5], (M3, K3), dtype=jnp.float32)
    w3 = jax.random.normal(ks[6], (K3, N3), dtype=jnp.float32) * 0.03
    b3 = jax.random.normal(ks[7], (N3,), dtype=jnp.float32) * 0.1
    y3 = jax.block_until_ready(confnet_forward(x3, w3, b3))
    y3_ref = jnp.dot(x3, w3, precision=HI) + b3
    assert jnp.allclose(y3, y3_ref, atol=2e-2, rtol=2e-2), "mismatch (tiled path)"

    # --- Test 4: many tiny heads fused into one pallas_call -----------------
    H, Mh, Kh, Nh = 4, 8, 32, 16
    xh = jax.random.normal(ks[8], (H, Mh, Kh), dtype=jnp.float32)
    wh = jax.random.normal(ks[9], (H, Kh, Nh), dtype=jnp.float32) * 0.1
    bh = jnp.arange(H * Nh, dtype=jnp.float32).reshape(H, Nh) * 0.01
    yh = jax.block_until_ready(confnet_forward_heads(xh, wh, bh))
    yh_ref = jnp.einsum("hmk,hkn->hmn", xh, wh, precision=HI) + bh[:, None, :]
    assert jnp.allclose(yh, yh_ref, atol=1e-4, rtol=1e-4), "mismatch (batched heads)"

    # --- Test 5: optional bf16 streaming (accuracy-budget gated) ------------
    y_bf16 = jax.block_until_ready(confnet_forward(x, w, b, precision="bfloat16"))
    assert jnp.allclose(y_bf16, y_ref, atol=1e-1, rtol=1e-1), "mismatch (bf16 path)"

    print("KERNEL_OK")
</pallas_src>

<mosaic_0001>
module attributes {stable_mosaic.version = 11 : i64} {
  func.func @_affine_kernel_bias(%arg0: memref<8x32xf32, #tpu.memory_space<vmem>>, %arg1: memref<32x32xf32, #tpu.memory_space<vmem>>, %arg2: memref<1x32xf32, #tpu.memory_space<vmem>>, %arg3: memref<8x32xf32, #tpu.memory_space<vmem>>) attributes {dimension_semantics = [], scalar_prefetch = 0 : i64, scratch_operands = 0 : i64, tpu.core_type = #tpu.core_type<tc>} {
    %c0 = arith.constant 0 : index
    %c0_0 = arith.constant 0 : index
    %0 = vector.load %arg0[%c0, %c0_0] : memref<8x32xf32, #tpu.memory_space<vmem>>, vector<8x32xf32>
    %c0_1 = arith.constant 0 : index
    %c0_2 = arith.constant 0 : index
    %1 = vector.load %arg1[%c0_1, %c0_2] : memref<32x32xf32, #tpu.memory_space<vmem>>, vector<32x32xf32>
    %cst = arith.constant dense<0.000000e+00> : vector<8x32xf32>
    %2 = tpu.matmul %0, %1, %cst {dimension_numbers = #tpu.dot_dimension_numbers<[1], [0], [0], [1], [0, 0, 1, 1], [], []>} : vector<8x32xf32>, vector<32x32xf32>, vector<8x32xf32> -> vector<8x32xf32>
    %c0_3 = arith.constant 0 : index
    %c0_4 = arith.constant 0 : index
    %3 = vector.load %arg2[%c0_3, %c0_4] : memref<1x32xf32, #tpu.memory_space<vmem>>, vector<1x32xf32>
    %4 = vector.broadcast %3 : vector<1x32xf32> to vector<8x32xf32>
    %5 = arith.addf %2, %4 : vector<8x32xf32>
    %c0_5 = arith.constant 0 : index
    %c0_6 = arith.constant 0 : index
    %6 = vector.load %arg3[%c0_5, %c0_6] : memref<8x32xf32, #tpu.memory_space<vmem>>, vector<8x32xf32>
    tpu.vector_store %arg3[%c0_5, %c0_6], %5 {strides = array<i32>} : memref<8x32xf32, #tpu.memory_space<vmem>>, vector<8x32xf32>,
    return
  }
}

</mosaic_0001>

<bundles_post_ra>
// kernel: _confnet_forward_impl.1
= control target key start
LH: loop header
LB: loop body
LE: loop exit
PB: predicated region body
PF: predicated region fallthrough
CT: control target
= control target key end

     0   :  { %8 = vsyncpa [#allocation3], 0  ;;  %s322_s0 = inlined_call_operand.hbm [shape: f32[8,32], index: 0, kind: input, shape index: {}]   ;;  %s323_s1 = inlined_call_operand.hbm [shape: f32[32,32], index: 1, kind: input, shape index: {}]   ;;  %s324_s2 = inlined_call_operand.vmem [shape: f32[1,32], index: 2, kind: input, shape index: {}]   ;;  %s325_s3 = inlined_call_operand.hbm [shape: f32[8,32], index: 3, kind: output, shape index: {}]  }
   0x1   :  { %9 = vsyncpa [#allocation6], 0 }
   0x2   :  { %10 = vsyncpa [#allocation4], 0  ;;  %s248_s12 = smov [#allocation2]   ;;  %s249_s14 = smov [#allocation5]  }
   0x3   :  { %s17_s13 = sshll.u32 %s248_s12, 4  ;;  %s26_s15 = sshll.u32 %s249_s14, 4  ;;  %s18_s13 = int_to_ptr.vmem [resolvable:$true] %s17_s13  ;;  %s276_s15 = int_to_ptr.vmem [resolvable:$true] %s26_s15 }
   0x4   :  { %s176_s18 = scalar_lea.hbm %s322_s0, 128 }
   0x5   :  { %p177_p0 = scmp.ne.s32.totalorder %s322_s0, %s176_s18  ;;  %p180_p1 = scmp.lt.u32.totalorder %s176_s18, %s322_s0 }
   0x7   :  { %p182_p2 = pnand %p180_p1, %p177_p0 }
   0x9   :  { %185 = shalt.err (!%p182_p2)
}
   0xa   :  { %s186_s23 = scalar_lea.vmem %s18_s13, 128  ;;  %p191_p4 = scmp.lt.s32.totalorder %s18_s13, %s18_s13 }
   0xb   :  { %p187_p3 = scmp.ne.s32.totalorder %s18_s13, %s186_s23  ;;  %p192_p5 = scmp.lt.s32.totalorder %s186_s23, %s186_s23 }
   0xd   :  { %p193_p6 = por %p192_p5, %p191_p4 }
   0xf   :  { %p194_p7 = pnand %p193_p6, %p187_p3 }
  0x11   :  { %197 = shalt.err (!%p194_p7)
}
  0x12   :  { %20 = dma.hbm_to_vmem [thread:$0]  %s322_s0, 128, %s18_s13, [#allocation3]  }
  0x13   :  { %s198_s28 = scalar_lea.hbm %s323_s1, 512 }
  0x14   :  { %p199_p8 = scmp.ne.s32.totalorder %s323_s1, %s198_s28  ;;  %p202_p9 = scmp.lt.u32.totalorder %s198_s28, %s323_s1 }
  0x16   :  { %p204_p10 = pnand %p202_p9, %p199_p8 }
  0x18   :  { %207 = shalt.err (!%p204_p10)
}
  0x19   :  { %s208_s6 = scalar_lea.vmem %s276_s15, 512  ;;  %p213_p12 = scmp.lt.s32.totalorder %s276_s15, %s276_s15 }
  0x1a   :  { %p209_p11 = scmp.ne.s32.totalorder %s276_s15, %s208_s6  ;;  %p214_p13 = scmp.lt.s32.totalorder %s208_s6, %s208_s6 }
  0x1c   :  { %p215_p0 = por %p214_p13, %p213_p12 }
  0x1e   :  { %p216_p1 = pnand %p215_p0, %p209_p11 }
  0x20   :  { %219 = shalt.err (!%p216_p1)
}
  0x21   :  { %s250_s0 = smov 128   ;;  %s251_s7 = smov 8  }
  0x22   :  { %32 = dma.hbm_to_vmem [thread:$0]  %s323_s1, 512, %s276_s15, [#allocation6], %s250_s0, %s250_s0, %s251_s7  }
  0x23   :  { %242 = dma.done.wait [#allocation3], 128  }
  0x24   :  { %243 = vsyncadd [#allocation3], 4294967168 }
  0x25   :  { %244 = dma.done.wait [#allocation6], 512  }
  0x26   :  { %245 = vsyncadd [#allocation6], 4294966784  ;;  %v252_v0 = vmov 0.0|0.0   ;;  %vm253_vm0 = vmmov 0   ;;  %v254_v1 = vmov 0.0   ;;  %v42_v2 = vld [vmem:[#allocation5] sm:$0xff] }
  0x27   :  { %162 = vmatprep.subr.bf16.mxu0 %v252_v0  ;;  %159 = vmatprep.mubr.msk.f32.mxu0 %vm253_vm0, %v254_v1  ;;  %v43_v3 = vld [vmem:[#allocation5 + $0x8] sm:$0xff]  ;;  %v44_v4 = vld [vmem:[#allocation5 + $0x10] sm:$0xff]  ;;  %v45_v6 = vld [vmem:[#allocation5 + $0x18] sm:$0xff]  ;;  %vm53_vm1 = vcmask 261120   ;;  %s255_s11 = smov [#allocation7]  }
  0x28   :  { %v163_v5 = vpack.c.bf16 %v43_v3, %v42_v2  ;;  %v166_v7 = vpack.c.bf16 %v45_v6, %v44_v4  ;;  %v41_v8 = vld [vmem:[#allocation2] sm:$0xff]  ;;  %s134_s12 = sshll.u32 %s255_s11, 4  ;;  %s135_s12 = int_to_ptr.vmem [resolvable:$true] %s134_s12 }
  0x29   :  { %v144_v9 = vld [vmem:[%s324_s2] ss:$0 sm:$0xff]  ;;  %s220_s13 = scalar_lea.vmem %s135_s12, 128  ;;  %p225_p3 = scmp.lt.s32.totalorder %s135_s12, %s135_s12 }
  0x2a   :  { %164 = vmatpush3.bf16.msra.mxu0 %v163_v5  ;;  %p221_p2 = scmp.ne.s32.totalorder %s135_s12, %s220_s13  ;;  %p226_p4 = scmp.lt.s32.totalorder %s220_s13, %s220_s13 }
  0x2b   :  { %165 = vmatprep.subr.bf16.mxu0 %v252_v0 }
  0x2c   :  { %p227_p5 = por %p226_p4, %p225_p3 }
  0x2e   :  { %167 = vmatpush3.bf16.msra.mxu0 %v166_v7  ;;  %p228_p6 = pnand %p227_p5, %p221_p2 }
  0x31   :  { %160 = vmatmul.mubr.msk.f32.vlgmr.msra.gmra.mrb[0].mxu0 %vm53_vm1, %v41_v8 }
 0x104   :  { %v123_v10 = vpop.f32.mrb[0].mxu0 }
 0x105   :  { %v124_v11 = vadd.f32 %v144_v9, %v123_v10  ;;  %v161_v12 = vpop.f32.mrb[1].mxu0 }
 0x107   :  { %127 = vst.msk [vmem:[#allocation7] sm:$0xff] %vm53_vm1, %v124_v11 }
 0x108   :  { %231 = shalt.err (!%p228_p6)
}
 0x109   :  { %s232_s16 = scalar_lea.hbm %s325_s3, 128 }
 0x10a   :  { %p233_p7 = scmp.ne.s32.totalorder %s325_s3, %s232_s16  ;;  %p236_p8 = scmp.lt.u32.totalorder %s232_s16, %s325_s3 }
 0x10c   :  { %p238_p9 = pnand %p236_p8, %p233_p7 }
 0x10e   :  { %241 = shalt.err (!%p238_p9)
}
 0x10f   :  { %137 = dma.vmem_to_hbm [thread:$0]  %s135_s12, 128, %s325_s3, [#allocation4]  }
 0x110   :  { %246 = dma.done.wait [#allocation4], 128  }
 0x111   :  { %247 = vsyncadd [#allocation4], 4294967168 }
 0x112   :  { %141 = vsyncpa [#allocation3], 1 }
 0x113   :  { %142 = vsyncpa [#allocation6], 1 }
 0x114   :  { %143 = vsyncpa [#allocation4], 1 }

</bundles_post_ra>
